<compile_context>
chip_gen: v7x
topology: tpu7x:2x2x1
jax: 0.10.0
libtpu: 0.0.40
codegen_flags: <defaults>
</compile_context>

<pallas_src>
import functools

import jax
import jax.numpy as jnp
from jax.experimental import pallas as pl
from jax.experimental.pallas import tpu as pltpu

EPS = 1e-5
H1 = 128           # first hidden width (lane dense already)
HP = 128           # padded lane width for the 64-wide hidden layer / n_classes
FUSED_MAX_BATCH = 1024   # whole-batch-in-VMEM path up to this many rows


# ---------------------------------------------------------------------------
# Fused single-block kernel (latency path, small/medium batch)
# ---------------------------------------------------------------------------
def _fused_kernel(x_ref, w1_ref, w23_ref, vec_ref, out_ref, *, inv_batch):
    """Whole forward pass on one VMEM-resident block.

    vec rows: 0=gamma1, 1=beta1, 2=gamma2(pad), 3=beta2(pad), 4=b3(pad).
    b1/b2 are omitted (cancelled exactly by BatchNorm mean subtraction).
    """
    x = x_ref[...].astype(jnp.bfloat16)                               # cast in-kernel

    # ---- Linear(D,128) + BN + ReLU ----
    h = jnp.dot(x, w1_ref[...], preferred_element_type=jnp.float32)   # (B,128) f32
    mean = jnp.sum(h, axis=0, keepdims=True) * inv_batch
    var = jnp.maximum(
        jnp.sum(h * h, axis=0, keepdims=True) * inv_batch - mean * mean, 0.0)
    scale = vec_ref[0:1, :] * jax.lax.rsqrt(var + EPS)
    shift = vec_ref[1:2, :] - mean * scale
    a1 = jnp.maximum(h * scale + shift, 0.0)

    # ---- Linear(128,64 -> padded 128) + BN + ReLU ----
    h = jnp.dot(a1.astype(jnp.bfloat16), w23_ref[:, 0:HP],
                preferred_element_type=jnp.float32)                   # (B,128) f32
    mean = jnp.sum(h, axis=0, keepdims=True) * inv_batch
    var = jnp.maximum(
        jnp.sum(h * h, axis=0, keepdims=True) * inv_batch - mean * mean, 0.0)
    scale = vec_ref[2:3, :] * jax.lax.rsqrt(var + EPS)
    shift = vec_ref[3:4, :] - mean * scale
    a2 = jnp.maximum(h * scale + shift, 0.0)

    # ---- Linear(64, n_classes), lane-dense 128-wide output ----
    out_ref[...] = (jnp.dot(a2.astype(jnp.bfloat16), w23_ref[:, HP:2 * HP],
                            preferred_element_type=jnp.float32)
                    + vec_ref[4:5, :])


def _forward_fused_padded(x, prep):
    batch = x.shape[0]
    operands = (x, prep["w1"], prep["w23"], prep["vec"])

    def full_spec(a):
        return pl.BlockSpec(a.shape, lambda: (0,) * a.ndim)

    return pl.pallas_call(
        functools.partial(_fused_kernel, inv_batch=1.0 / batch),
        grid=(),
        in_specs=[full_spec(a) for a in operands],
        out_specs=pl.BlockSpec((batch, HP), lambda: (0, 0)),
        out_shape=jax.ShapeDtypeStruct((batch, HP), jnp.float32),
    )(*operands)


# ---------------------------------------------------------------------------
# Batch-tiled streaming path (large batch): three pipelined pallas_calls
# ---------------------------------------------------------------------------
def _l1_kernel(x_ref, w1_ref, h1_ref, stats1_ref):
    i = pl.program_id(0)
    h = jnp.dot(x_ref[...].astype(jnp.bfloat16), w1_ref[...],
                preferred_element_type=jnp.float32)                   # (Bt,128)
    h1_ref[...] = h

    @pl.when(i == 0)
    def _():
        stats1_ref[...] = jnp.zeros_like(stats1_ref)

    # padded batch rows of x are exact zeros and there is no bias here,
    # so they contribute nothing to the statistics.
    stats1_ref[0:1, :] += jnp.sum(h, axis=0, keepdims=True)
    stats1_ref[1:2, :] += jnp.sum(h * h, axis=0, keepdims=True)


def _l2_kernel(h1_ref, stats1_ref, vec_ref, w23_ref, h2_ref, stats2_ref, *,
               inv_batch, tile, batch):
    i = pl.program_id(0)
    mean = stats1_ref[0:1, :] * inv_batch
    var = jnp.maximum(stats1_ref[1:2, :] * inv_batch - mean * mean, 0.0)
    scale = vec_ref[0:1, :] * jax.lax.rsqrt(var + EPS)
    shift = vec_ref[1:2, :] - mean * scale
    a1 = jnp.maximum(h1_ref[...] * scale + shift, 0.0)

    # Zero padded batch rows so they do not pollute the layer-2 statistics.
    row = jax.lax.broadcasted_iota(jnp.int32, a1.shape, 0) + i * tile
    a1 = jnp.where(row < batch, a1, 0.0)

    h = jnp.dot(a1.astype(jnp.bfloat16), w23_ref[:, 0:HP],
                preferred_element_type=jnp.float32)                   # (Bt,128)
    h2_ref[...] = h

    @pl.when(i == 0)
    def _():
        stats2_ref[...] = jnp.zeros_like(stats2_ref)

    stats2_ref[0:1, :] += jnp.sum(h, axis=0, keepdims=True)
    stats2_ref[1:2, :] += jnp.sum(h * h, axis=0, keepdims=True)


def _l3_kernel(h2_ref, stats2_ref, vec_ref, w23_ref, out_ref, *, inv_batch):
    mean = stats2_ref[0:1, :] * inv_batch
    var = jnp.maximum(stats2_ref[1:2, :] * inv_batch - mean * mean, 0.0)
    scale = vec_ref[2:3, :] * jax.lax.rsqrt(var + EPS)
    shift = vec_ref[3:4, :] - mean * scale
    a2 = jnp.maximum(h2_ref[...] * scale + shift, 0.0)
    out_ref[...] = (jnp.dot(a2.astype(jnp.bfloat16), w23_ref[:, HP:2 * HP],
                            preferred_element_type=jnp.float32)
                    + vec_ref[4:5, :])


def _forward_tiled_padded(x, prep, *, tile=1024):
    """Streaming path: batch tiled, BN stats accumulated across tiles.

    NOTE(v7x): tile=1024 keeps per-step VMEM well under the 32 MiB scoped
    default (~1 MiB double-buffered per operand), so no explicit
    vmem_limit_bytes is needed; re-derive if the tile is raised.
    """
    batch, d = x.shape
    bt = min(tile, batch)
    nt = pl.cdiv(batch, bt)
    bp = nt * bt
    if bp != batch:
        x = jnp.pad(x, ((0, bp - batch), (0, 0)))     # zero rows: stats-safe
    inv_b = 1.0 / batch

    w1, w23, vec = prep["w1"], prep["w23"], prep["vec"]

    # ---- layer 1: matmul + stats accumulation ----
    h1, stats1 = pl.pallas_call(
        _l1_kernel,
        grid=(nt,),
        in_specs=[pl.BlockSpec((bt, d), lambda i: (i, 0)),
                  pl.BlockSpec((d, H1), lambda i: (0, 0))],
        out_specs=(pl.BlockSpec((bt, H1), lambda i: (i, 0)),
                   pl.BlockSpec((2, H1), lambda i: (0, 0))),
        out_shape=(jax.ShapeDtypeStruct((bp, H1), jnp.float32),
                   jax.ShapeDtypeStruct((2, H1), jnp.float32)),
        compiler_params=pltpu.CompilerParams(
            dimension_semantics=("arbitrary",)),
    )(x, w1)

    # ---- layer 2: normalize + ReLU + matmul + stats accumulation ----
    h2, stats2 = pl.pallas_call(
        functools.partial(_l2_kernel, inv_batch=inv_b, tile=bt, batch=batch),
        grid=(nt,),
        in_specs=[pl.BlockSpec((bt, H1), lambda i: (i, 0)),
                  pl.BlockSpec((2, H1), lambda i: (0, 0)),
                  pl.BlockSpec((8, HP), lambda i: (0, 0)),
                  pl.BlockSpec((H1, 2 * HP), lambda i: (0, 0))],
        out_specs=(pl.BlockSpec((bt, HP), lambda i: (i, 0)),
                   pl.BlockSpec((2, HP), lambda i: (0, 0))),
        out_shape=(jax.ShapeDtypeStruct((bp, HP), jnp.float32),
                   jax.ShapeDtypeStruct((2, HP), jnp.float32)),
        compiler_params=pltpu.CompilerParams(
            dimension_semantics=("arbitrary",)),
    )(h1, stats1, vec, w23)

    # ---- layer 3: normalize + ReLU + matmul + bias (no cross-tile dep) ----
    out = pl.pallas_call(
        functools.partial(_l3_kernel, inv_batch=inv_b),
        grid=(nt,),
        in_specs=[pl.BlockSpec((bt, HP), lambda i: (i, 0)),
                  pl.BlockSpec((2, HP), lambda i: (0, 0)),
                  pl.BlockSpec((8, HP), lambda i: (0, 0)),
                  pl.BlockSpec((H1, 2 * HP), lambda i: (0, 0))],
        out_specs=pl.BlockSpec((bt, HP), lambda i: (i, 0)),
        out_shape=jax.ShapeDtypeStruct((bp, HP), jnp.float32),
        compiler_params=pltpu.CompilerParams(
            dimension_semantics=("parallel",)),
    )(h2, stats2, vec, w23)
    return out


# ---------------------------------------------------------------------------
# Public API
# ---------------------------------------------------------------------------
def prepare_params(params):
    """One-time packing / padding / bf16 casting of the Learner parameters.

    Call once per parameter set; reuse the result for every forward call.
    b1/b2 are intentionally dropped (cancelled by training-mode BatchNorm).
    """
    n_classes = params["w3"].shape[1]
    h2 = params["w2"].shape[1]
    assert n_classes <= HP and h2 <= HP

    w1 = params["w1"].astype(jnp.bfloat16)                                 # (D,128)
    w23 = jnp.zeros((H1, 2 * HP), jnp.bfloat16)
    w23 = w23.at[:, :h2].set(params["w2"].astype(jnp.bfloat16))            # w2 block
    w23 = w23.at[:h2, HP:HP + n_classes].set(params["w3"].astype(jnp.bfloat16))

    vec = jnp.zeros((8, HP), jnp.float32)
    vec = vec.at[0, :H1].set(params["g1"].reshape(-1))
    vec = vec.at[1, :H1].set(params["be1"].reshape(-1))
    vec = vec.at[2, :h2].set(params["g2"].reshape(-1))
    vec = vec.at[3, :h2].set(params["be2"].reshape(-1))
    vec = vec.at[4, :n_classes].set(params["b3"].reshape(-1))

    return {"w1": w1, "w23": w23, "vec": vec, "n_classes": n_classes}


def learner_forward_padded(x, prep, *, tile=1024, force_tiled=False):
    """Lane-padded (batch_padded, 128) f32 logits; cols >= n_classes are 0.

    Prefer this entry point when the consumer can fuse the final slice.
    """
    if force_tiled or x.shape[0] > FUSED_MAX_BATCH:
        return _forward_tiled_padded(x, prep, tile=tile)
    return _forward_fused_padded(x, prep)


def learner_forward(x, prep, *, tile=1024, force_tiled=False):
    """(batch, n_classes) f32 logits, PyTorch-forward equivalent."""
    out = learner_forward_padded(x, prep, tile=tile, force_tiled=force_tiled)
    return out[: x.shape[0], : prep["n_classes"]]


# ---------------------------------------------------------------------------
# Init + references
# ---------------------------------------------------------------------------
def init_params(key, input_dim, n_classes):
    """Deterministic synthetic parameter init (shapes match the PyTorch module)."""
    k1, k2, k3 = jax.random.split(key, 3)

    def lin_init(k, fan_in, fan_out):
        bound = 1.0 / jnp.sqrt(fan_in)
        kw, kb = jax.random.split(k)
        w = jax.random.uniform(kw, (fan_in, fan_out), jnp.float32, -bound, bound)
        b = jax.random.uniform(kb, (1, fan_out), jnp.float32, -bound, bound)
        return w, b

    w1, b1 = lin_init(k1, input_dim, 128)
    w2, b2 = lin_init(k2, 128, 64)
    w3, b3 = lin_init(k3, 64, n_classes)

    return {
        "w1": w1, "b1": b1,
        "g1": jnp.ones((1, 128), jnp.float32), "be1": jnp.zeros((1, 128), jnp.float32),
        "w2": w2, "b2": b2,
        "g2": jnp.ones((1, 64), jnp.float32), "be2": jnp.zeros((1, 64), jnp.float32),
        "w3": w3, "b3": b3,
    }


def learner_forward_ref_f32(x, p):
    """Full-f32 PyTorch-equivalent reference (training-mode BatchNorm)."""
    h = x @ p["w1"] + p["b1"]
    m = h.mean(0, keepdims=True)
    v = ((h - m) ** 2).mean(0, keepdims=True)
    h = jnp.maximum((h - m) / jnp.sqrt(v + EPS) * p["g1"] + p["be1"], 0.0)
    h = h @ p["w2"] + p["b2"]
    m = h.mean(0, keepdims=True)
    v = ((h - m) ** 2).mean(0, keepdims=True)
    h = jnp.maximum((h - m) / jnp.sqrt(v + EPS) * p["g2"] + p["be2"], 0.0)
    return h @ p["w3"] + p["b3"]


def learner_forward_ref_bf16(x, p):
    """Same math as the kernel: bf16 MXU inputs, f32 accumulation, bias folded
    into BN, one-pass sum/sumsq statistics."""
    def dot(a, b):
        return jnp.dot(a.astype(jnp.bfloat16), b.astype(jnp.bfloat16),
                       preferred_element_type=jnp.float32)

    inv_n = 1.0 / x.shape[0]
    h = dot(x, p["w1"])
    m = jnp.sum(h, 0, keepdims=True) * inv_n
    v = jnp.maximum(jnp.sum(h * h, 0, keepdims=True) * inv_n - m * m, 0.0)
    sc = p["g1"] * jax.lax.rsqrt(v + EPS)
    sh = p["be1"] - m * sc
    h = jnp.maximum(h * sc + sh, 0.0)

    h = dot(h, p["w2"])
    m = jnp.sum(h, 0, keepdims=True) * inv_n
    v = jnp.maximum(jnp.sum(h * h, 0, keepdims=True) * inv_n - m * m, 0.0)
    sc = p["g2"] * jax.lax.rsqrt(v + EPS)
    sh = p["be2"] - m * sc
    h = jnp.maximum(h * sc + sh, 0.0)

    return dot(h, p["w3"]) + p["b3"]


if __name__ == "__main__":
    input_dim, n_classes = 32, 5

    key = jax.random.PRNGKey(0)
    kx, kp, kx2 = jax.random.split(key, 3)
    params = init_params(kp, input_dim, n_classes)
    prep = prepare_params(params)            # one-time parameter prep

    # ---- fused latency path (small batch) ----
    x = jax.random.normal(kx, (8, input_dim), jnp.float32)
    out = jax.block_until_ready(learner_forward(x, prep))
    assert out.shape == (8, n_classes)

    ref_bf16 = learner_forward_ref_bf16(x, params)
    assert jnp.allclose(out, ref_bf16, atol=1e-4, rtol=1e-4), "fused: mismatch vs bf16 ref"
    ref_f32 = learner_forward_ref_f32(x, params)
    assert jnp.allclose(out, ref_f32, atol=5e-2, rtol=5e-2), "fused: mismatch vs f32 ref"

    # ---- batch-tiled streaming path (uneven batch exercises pad/mask) ----
    xb = jax.random.normal(kx2, (200, input_dim), jnp.float32)
    outb = jax.block_until_ready(
        learner_forward(xb, prep, tile=128, force_tiled=True))
    assert outb.shape == (200, n_classes)
    refb_f32 = learner_forward_ref_f32(xb, params)
    assert jnp.allclose(outb, refb_f32, atol=5e-2, rtol=5e-2), "tiled: mismatch vs f32 ref"

    print("KERNEL_OK")
</pallas_src>

<mosaic_0001>
module attributes {stable_mosaic.version = 11 : i64} {
  func.func @_fused_kernel(%arg0: memref<8x32xf32, #tpu.memory_space<vmem>>, %arg1: memref<32x128xbf16, #tpu.memory_space<vmem>>, %arg2: memref<128x256xbf16, #tpu.memory_space<vmem>>, %arg3: memref<8x128xf32, #tpu.memory_space<vmem>>, %arg4: memref<8x128xf32, #tpu.memory_space<vmem>>) attributes {dimension_semantics = [], scalar_prefetch = 0 : i64, scratch_operands = 0 : i64, tpu.core_type = #tpu.core_type<tc>} {
    %c0 = arith.constant 0 : index
    %c0_0 = arith.constant 0 : index
    %0 = vector.load %arg0[%c0, %c0_0] : memref<8x32xf32, #tpu.memory_space<vmem>>, vector<8x32xf32>
    %1 = arith.truncf %0 : vector<8x32xf32> to vector<8x32xbf16>
    %c0_1 = arith.constant 0 : index
    %c0_2 = arith.constant 0 : index
    %2 = vector.load %arg1[%c0_1, %c0_2] : memref<32x128xbf16, #tpu.memory_space<vmem>>, vector<32x128xbf16>
    %cst = arith.constant dense<0.000000e+00> : vector<8x128xf32>
    %3 = tpu.matmul %1, %2, %cst {dimension_numbers = #tpu.dot_dimension_numbers<[1], [0], [0], [1], [0, 0, 1, 1], [], []>} : vector<8x32xbf16>, vector<32x128xbf16>, vector<8x128xf32> -> vector<8x128xf32>
    %cst_3 = arith.constant dense<0.000000e+00> : vector<128xf32>
    %4 = vector.multi_reduction <add>, %3, %cst_3 [0] : vector<8x128xf32> to vector<128xf32>
    %5 = vector.shape_cast %4 : vector<128xf32> to vector<1x128xf32>
    %cst_4 = arith.constant 1.250000e-01 : f32
    %6 = vector.broadcast %cst_4 : f32 to vector<1x128xf32>
    %7 = arith.mulf %5, %6 : vector<1x128xf32>
    %8 = arith.mulf %3, %3 : vector<8x128xf32>
    %cst_5 = arith.constant dense<0.000000e+00> : vector<128xf32>
    %9 = vector.multi_reduction <add>, %8, %cst_5 [0] : vector<8x128xf32> to vector<128xf32>
    %10 = vector.shape_cast %9 : vector<128xf32> to vector<1x128xf32>
    %cst_6 = arith.constant 1.250000e-01 : f32
    %11 = vector.broadcast %cst_6 : f32 to vector<1x128xf32>
    %12 = arith.mulf %10, %11 : vector<1x128xf32>
    %13 = arith.mulf %7, %7 : vector<1x128xf32>
    %14 = arith.subf %12, %13 : vector<1x128xf32>
    %cst_7 = arith.constant 0.000000e+00 : f32
    %15 = vector.broadcast %cst_7 : f32 to vector<1x128xf32>
    %16 = arith.maximumf %14, %15 : vector<1x128xf32>
    %c0_8 = arith.constant 0 : index
    %c0_9 = arith.constant 0 : index
    %17 = vector.load %arg3[%c0_8, %c0_9] : memref<8x128xf32, #tpu.memory_space<vmem>>, vector<1x128xf32>
    %cst_10 = arith.constant 9.99999974E-6 : f32
    %18 = vector.broadcast %cst_10 : f32 to vector<1x128xf32>
    %19 = arith.addf %16, %18 : vector<1x128xf32>
    %20 = math.rsqrt %19 : vector<1x128xf32>
    %21 = arith.mulf %17, %20 : vector<1x128xf32>
    %c1 = arith.constant 1 : index
    %c0_11 = arith.constant 0 : index
    %22 = vector.load %arg3[%c1, %c0_11] : memref<8x128xf32, #tpu.memory_space<vmem>>, vector<1x128xf32>
    %23 = arith.mulf %7, %21 : vector<1x128xf32>
    %24 = arith.subf %22, %23 : vector<1x128xf32>
    %25 = vector.broadcast %21 : vector<1x128xf32> to vector<8x128xf32>
    %26 = arith.mulf %3, %25 : vector<8x128xf32>
    %27 = vector.broadcast %24 : vector<1x128xf32> to vector<8x128xf32>
    %28 = arith.addf %26, %27 : vector<8x128xf32>
    %cst_12 = arith.constant 0.000000e+00 : f32
    %29 = vector.broadcast %cst_12 : f32 to vector<8x128xf32>
    %30 = arith.maximumf %28, %29 : vector<8x128xf32>
    %31 = arith.truncf %30 : vector<8x128xf32> to vector<8x128xbf16>
    %c0_13 = arith.constant 0 : index
    %c0_14 = arith.constant 0 : index
    %32 = vector.load %arg2[%c0_13, %c0_14] : memref<128x256xbf16, #tpu.memory_space<vmem>>, vector<128x128xbf16>
    %cst_15 = arith.constant dense<0.000000e+00> : vector<8x128xf32>
    %33 = tpu.matmul %31, %32, %cst_15 {dimension_numbers = #tpu.dot_dimension_numbers<[1], [0], [0], [1], [0, 0, 1, 1], [], []>} : vector<8x128xbf16>, vector<128x128xbf16>, vector<8x128xf32> -> vector<8x128xf32>
    %cst_16 = arith.constant dense<0.000000e+00> : vector<128xf32>
    %34 = vector.multi_reduction <add>, %33, %cst_16 [0] : vector<8x128xf32> to vector<128xf32>
    %35 = vector.shape_cast %34 : vector<128xf32> to vector<1x128xf32>
    %cst_17 = arith.constant 1.250000e-01 : f32
    %36 = vector.broadcast %cst_17 : f32 to vector<1x128xf32>
    %37 = arith.mulf %35, %36 : vector<1x128xf32>
    %38 = arith.mulf %33, %33 : vector<8x128xf32>
    %cst_18 = arith.constant dense<0.000000e+00> : vector<128xf32>
    %39 = vector.multi_reduction <add>, %38, %cst_18 [0] : vector<8x128xf32> to vector<128xf32>
    %40 = vector.shape_cast %39 : vector<128xf32> to vector<1x128xf32>
    %cst_19 = arith.constant 1.250000e-01 : f32
    %41 = vector.broadcast %cst_19 : f32 to vector<1x128xf32>
    %42 = arith.mulf %40, %41 : vector<1x128xf32>
    %43 = arith.mulf %37, %37 : vector<1x128xf32>
    %44 = arith.subf %42, %43 : vector<1x128xf32>
    %cst_20 = arith.constant 0.000000e+00 : f32
    %45 = vector.broadcast %cst_20 : f32 to vector<1x128xf32>
    %46 = arith.maximumf %44, %45 : vector<1x128xf32>
    %c2 = arith.constant 2 : index
    %c0_21 = arith.constant 0 : index
    %47 = vector.load %arg3[%c2, %c0_21] : memref<8x128xf32, #tpu.memory_space<vmem>>, vector<1x128xf32>
    %cst_22 = arith.constant 9.99999974E-6 : f32
    %48 = vector.broadcast %cst_22 : f32 to vector<1x128xf32>
    %49 = arith.addf %46, %48 : vector<1x128xf32>
    %50 = math.rsqrt %49 : vector<1x128xf32>
    %51 = arith.mulf %47, %50 : vector<1x128xf32>
    %c3 = arith.constant 3 : index
    %c0_23 = arith.constant 0 : index
    %52 = vector.load %arg3[%c3, %c0_23] : memref<8x128xf32, #tpu.memory_space<vmem>>, vector<1x128xf32>
    %53 = arith.mulf %37, %51 : vector<1x128xf32>
    %54 = arith.subf %52, %53 : vector<1x128xf32>
    %55 = vector.broadcast %51 : vector<1x128xf32> to vector<8x128xf32>
    %56 = arith.mulf %33, %55 : vector<8x128xf32>
    %57 = vector.broadcast %54 : vector<1x128xf32> to vector<8x128xf32>
    %58 = arith.addf %56, %57 : vector<8x128xf32>
    %cst_24 = arith.constant 0.000000e+00 : f32
    %59 = vector.broadcast %cst_24 : f32 to vector<8x128xf32>
    %60 = arith.maximumf %58, %59 : vector<8x128xf32>
    %61 = arith.truncf %60 : vector<8x128xf32> to vector<8x128xbf16>
    %c0_25 = arith.constant 0 : index
    %c128 = arith.constant 128 : index
    %62 = vector.load %arg2[%c0_25, %c128] : memref<128x256xbf16, #tpu.memory_space<vmem>>, vector<128x128xbf16>
    %cst_26 = arith.constant dense<0.000000e+00> : vector<8x128xf32>
    %63 = tpu.matmul %61, %62, %cst_26 {dimension_numbers = #tpu.dot_dimension_numbers<[1], [0], [0], [1], [0, 0, 1, 1], [], []>} : vector<8x128xbf16>, vector<128x128xbf16>, vector<8x128xf32> -> vector<8x128xf32>
    %c4 = arith.constant 4 : index
    %c0_27 = arith.constant 0 : index
    %64 = vector.load %arg3[%c4, %c0_27] : memref<8x128xf32, #tpu.memory_space<vmem>>, vector<1x128xf32>
    %65 = vector.broadcast %64 : vector<1x128xf32> to vector<8x128xf32>
    %66 = arith.addf %63, %65 : vector<8x128xf32>
    %c0_28 = arith.constant 0 : index
    %c0_29 = arith.constant 0 : index
    %67 = vector.load %arg4[%c0_28, %c0_29] : memref<8x128xf32, #tpu.memory_space<vmem>>, vector<8x128xf32>
    tpu.vector_store %arg4[%c0_28, %c0_29], %66 {strides = array<i32>} : memref<8x128xf32, #tpu.memory_space<vmem>>, vector<8x128xf32>,
    return
  }
}

</mosaic_0001>

<bundles_post_ra>
// kernel: tpu_custom_call.1
= control target key start
LH: loop header
LB: loop body
LE: loop exit
PB: predicated region body
PF: predicated region fallthrough
CT: control target
= control target key end

     0   :  { %9 = vsyncpa [#allocation3], 0  ;;  %s764_s0 = inlined_call_operand.hbm [shape: f32[8,32], index: 0, kind: input, shape index: {}]   ;;  %s765_s1 = inlined_call_operand.hbm [shape: bf16[32,128], index: 1, kind: input, shape index: {}]   ;;  %s766_s2 = inlined_call_operand.hbm [shape: bf16[128,256], index: 2, kind: input, shape index: {}]   ;;  %s767_s3 = inlined_call_operand.vmem [shape: f32[8,128], index: 3, kind: input, shape index: {}]   ;;  %s768_s4 = inlined_call_operand.hbm [shape: f32[8,128], index: 4, kind: output, shape index: {}]  }
   0x1   :  { %10 = vsyncpa [#allocation6], 0 }
   0x2   :  { %11 = vsyncpa [#allocation4], 0  ;;  %s639_s15 = smov [#allocation5]   ;;  %s545_s19 = scalar_lea.hbm %s765_s1, 256 }
   0x3   :  { %s27_s16 = sshll.u32 %s639_s15, 4  ;;  %p546_p0 = scmp.ne.s32.totalorder %s765_s1, %s545_s19  ;;  %s28_s16 = int_to_ptr.vmem [resolvable:$true] %s27_s16 }
   0x4   :  { %p549_p1 = scmp.lt.u32.totalorder %s545_s19, %s765_s1 }
   0x6   :  { %p551_p2 = pnand %p549_p1, %p546_p0 }
   0x8   :  { %554 = shalt.err (!%p551_p2)
}
   0x9   :  { %s555_s24 = scalar_lea.vmem %s28_s16, 256  ;;  %p560_p4 = scmp.lt.s32.totalorder %s28_s16, %s28_s16 }
   0xa   :  { %p556_p3 = scmp.ne.s32.totalorder %s28_s16, %s555_s24  ;;  %p561_p5 = scmp.lt.s32.totalorder %s555_s24, %s555_s24 }
   0xc   :  { %p562_p6 = por %p561_p5, %p560_p4 }
   0xe   :  { %p563_p7 = pnand %p562_p6, %p556_p3 }
  0x10   :  { %566 = shalt.err (!%p563_p7)
}
  0x11   :  { %s640_s25 = smov 64   ;;  %s641_s26 = smov 4  }
  0x12   :  { %33 = dma.hbm_to_vmem [thread:$0]  %s765_s1, 256, %s28_s16, [#allocation6], %s640_s25, %s640_s25, %s641_s26  }
  0x13   :  { %s642_s29 = smov [#allocation2]   ;;  %s643_s5 = smov [#allocation7]  }
  0x14   :  { %s18_s30 = sshll.u32 %s642_s29, 4  ;;  %s39_s6 = sshll.u32 %s643_s5, 4  ;;  %s19_s30 = int_to_ptr.vmem [resolvable:$true] %s18_s30  ;;  %s40_s6 = int_to_ptr.vmem [resolvable:$true] %s39_s6 }
  0x15   :  { %s567_s9 = scalar_lea.hbm %s764_s0, 128 }
  0x16   :  { %p568_p8 = scmp.ne.s32.totalorder %s764_s0, %s567_s9  ;;  %p571_p9 = scmp.lt.u32.totalorder %s567_s9, %s764_s0 }
  0x18   :  { %p573_p10 = pnand %p571_p9, %p568_p8 }
  0x1a   :  { %576 = shalt.err (!%p573_p10)
}
  0x1b   :  { %s577_s1 = scalar_lea.vmem %s19_s30, 128  ;;  %p582_p12 = scmp.lt.s32.totalorder %s19_s30, %s19_s30 }
  0x1c   :  { %p578_p11 = scmp.ne.s32.totalorder %s19_s30, %s577_s1  ;;  %p583_p13 = scmp.lt.s32.totalorder %s577_s1, %s577_s1 }
  0x1e   :  { %p584_p0 = por %p583_p13, %p582_p12 }
  0x20   :  { %p585_p1 = pnand %p584_p0, %p578_p11 }
  0x22   :  { %588 = shalt.err (!%p585_p1)
}
  0x23   :  { %21 = dma.hbm_to_vmem [thread:$0]  %s764_s0, 128, %s19_s30, [#allocation3]  }
  0x24   :  { %s589_s18 = scalar_lea.hbm %s766_s2, 2048 }
  0x25   :  { %p590_p2 = scmp.ne.s32.totalorder %s766_s2, %s589_s18  ;;  %p593_p3 = scmp.lt.u32.totalorder %s589_s18, %s766_s2 }
  0x27   :  { %p595_p4 = pnand %p593_p3, %p590_p2 }
  0x29   :  { %598 = shalt.err (!%p595_p4)
}
  0x2a   :  { %s599_s23 = scalar_lea.vmem %s40_s6, 2048  ;;  %p604_p6 = scmp.lt.s32.totalorder %s40_s6, %s40_s6 }
  0x2b   :  { %p600_p5 = scmp.ne.s32.totalorder %s40_s6, %s599_s23  ;;  %p605_p7 = scmp.lt.s32.totalorder %s599_s23, %s599_s23 }
  0x2d   :  { %p606_p8 = por %p605_p7, %p604_p6 }
  0x2f   :  { %p607_p9 = pnand %p606_p8, %p600_p5 }
  0x31   :  { %610 = shalt.err (!%p607_p9)
}
  0x32   :  { %s644_s0 = smov 128   ;;  %s645_s24 = smov 8  }
  0x33   :  { %45 = dma.hbm_to_vmem [thread:$0]  %s766_s2, 2048, %s40_s6, [#allocation6], %s644_s0, %s644_s0, %s645_s24  }
  0x34   :  { %633 = dma.done.wait [#allocation3], 128  }
  0x35   :  { %634 = vsyncadd [#allocation3], 4294967168 }
  0x36   :  { %635 = dma.done.wait [#allocation6], 2304  }
  0x37   :  { %636 = vsyncadd [#allocation6], 4294964992  ;;  %v646_v0 = vmov 0.0   ;;  %vm647_vm0 = vmmov 0   ;;  %v523_v1 = vld [vmem:[#allocation5] sm:$0xff]   ;;  %v524_v2 = vld [vmem:[#allocation5 + $0x8] sm:$0xff]   ;;  %v145_v36 = vlaneseq }
  0x38   :  { %465 = vmatprep.subr.bf16.mxu0 %v646_v0  ;;  %469 = vmatprep.mubr.msk.bf16.mxu0 %vm647_vm0, %v646_v0  ;;  %v58_v3 = vld [vmem:[#allocation2] sm:$0xff]  ;;  %vm76_vm1 = vcmask 261120   ;;  %v526_v6 = vld [vmem:[#allocation7 + $0x10] ss:$8 sps:$4 sm:$0xff]   ;;  %v534_v52 = vld [vmem:[#allocation7 + $0x14] ss:$8 sps:$4 sm:$0xff]  }
  0x39   :  { %473 = vmatprep.subr.bf16.mxu1 %v646_v0  ;;  %489 = vmatprep.mubr.msk.bf16.mxu1 %vm647_vm0, %v646_v0  ;;  %v59_v4 = vpack.c.bf16 %v58_v3, %v58_v3  ;;  %v525_v5 = vld [vmem:[#allocation7] ss:$8 sps:$4 sm:$0xff]   ;;  %v528_v8 = vld [vmem:[#allocation7 + $0x30] ss:$8 sps:$4 sm:$0xff]   ;;  %v146_v37 = vshrl.u32 %v145_v36, 7  ;;  %s648_s10 = smov [#allocation8]  }
  0x3a   :  { %466 = vmatpush3.bf16.msra.mxu0 %v523_v1  ;;  %474 = vmatpush3.bf16.msra.mxu1 %v525_v5  ;;  %v527_v7 = vld [vmem:[#allocation7 + $0x20] ss:$8 sps:$4 sm:$0xff]   ;;  %v530_v10 = vld [vmem:[#allocation7 + $0x50] ss:$8 sps:$4 sm:$0xff]   ;;  %v533_v51 = vld [vmem:[#allocation7 + $0x4] ss:$8 sps:$4 sm:$0xff]  }
  0x3b   :  { %467 = vmatprep.subr.bf16.mxu0 %v646_v0  ;;  %475 = vmatprep.subr.bf16.mxu1 %v646_v0  ;;  %v529_v9 = vld [vmem:[#allocation7 + $0x40] ss:$8 sps:$4 sm:$0xff]   ;;  %v532_v12 = vld [vmem:[#allocation7 + $0x70] ss:$8 sps:$4 sm:$0xff]   ;;  %v727_v39 = vsub.s32 0, %v146_v37  ;;  %s414_s11 = sshll.u32 %s648_s10, 4  ;;  %s415_s11 = int_to_ptr.vmem [resolvable:$true] %s414_s11 }
  0x3c   :  { %v531_v11 = vld [vmem:[#allocation7 + $0x60] ss:$8 sps:$4 sm:$0xff]   ;;  %v535_v53 = vld [vmem:[#allocation7 + $0x24] ss:$8 sps:$4 sm:$0xff]   ;;  %v536_v54 = vld [vmem:[#allocation7 + $0x34] ss:$8 sps:$4 sm:$0xff]   ;;  %p616_p11 = scmp.lt.s32.totalorder %s415_s11, %s415_s11 }
  0x3d   :  { %v138_v38 = vld [vmem:[%s767_s3] sm:$0x1]  ;;  %v142_v42 = vld [vmem:[%s767_s3 + $0x1] sm:$0x1]  ;;  %v537_v55 = vld [vmem:[#allocation7 + $0x44] ss:$8 sps:$4 sm:$0xff]  }
  0x3e   :  { %468 = vmatpush3.bf16.msra.mxu0 %v524_v2  ;;  %476 = vmatpush3.bf16.msra.mxu1 %v526_v6  ;;  %v538_v56 = vld [vmem:[#allocation7 + $0x54] ss:$8 sps:$4 sm:$0xff]   ;;  %v539_v57 = vld [vmem:[#allocation7 + $0x64] ss:$8 sps:$4 sm:$0xff]   ;;  %s611_s12 = scalar_lea.vmem %s415_s11, 128 }
  0x3f   :  { %493 = vmatprep.subr.bf16.mxu0 %v646_v0  ;;  %477 = vmatprep.subr.bf16.mxu1 %v646_v0  ;;  %v540_v58 = vld [vmem:[#allocation7 + $0x74] ss:$8 sps:$4 sm:$0xff]   ;;  %p612_p10 = scmp.ne.s32.totalorder %s415_s11, %s611_s12  ;;  %p617_p12 = scmp.lt.s32.totalorder %s611_s12, %s611_s12 }
  0x41   :  { %470 = vmatmul.mubr.msk.bf16.vlgmr.msra.gmra.mrb[0].mxu0 %vm76_vm1, %v59_v4  ;;  %p618_p13 = por %p617_p12, %p616_p11 }
  0x42   :  { %509 = vmatprep.mubr.msk.bf16.mxu0 %vm647_vm0, %v646_v0  ;;  %478 = vmatpush3.bf16.msra.mxu1 %v527_v7 }
  0x43   :  { %479 = vmatprep.subr.bf16.mxu1 %v646_v0  ;;  %494 = vmatpush3.bf16.msra.mxu0 %v533_v51  ;;  %p619_p0 = pnand %p618_p13, %p612_p10 }
  0x44   :  { %495 = vmatprep.subr.bf16.mxu0 %v646_v0 }
  0x46   :  { %480 = vmatpush3.bf16.msra.mxu1 %v528_v8 }
  0x47   :  { %481 = vmatprep.subr.bf16.mxu1 %v646_v0  ;;  %496 = vmatpush3.bf16.msra.mxu0 %v534_v52 }
  0x48   :  { %497 = vmatprep.subr.bf16.mxu0 %v646_v0 }
  0x4a   :  { %482 = vmatpush3.bf16.msra.mxu1 %v529_v9 }
  0x4b   :  { %483 = vmatprep.subr.bf16.mxu1 %v646_v0  ;;  %498 = vmatpush3.bf16.msra.mxu0 %v535_v53 }
  0x4c   :  { %499 = vmatprep.subr.bf16.mxu0 %v646_v0 }
  0x4e   :  { %484 = vmatpush3.bf16.msra.mxu1 %v530_v10 }
  0x4f   :  { %485 = vmatprep.subr.bf16.mxu1 %v646_v0  ;;  %500 = vmatpush3.bf16.msra.mxu0 %v536_v54 }
  0x50   :  { %501 = vmatprep.subr.bf16.mxu0 %v646_v0 }
  0x52   :  { %486 = vmatpush3.bf16.msra.mxu1 %v531_v11 }
  0x53   :  { %487 = vmatprep.subr.bf16.mxu1 %v646_v0  ;;  %502 = vmatpush3.bf16.msra.mxu0 %v537_v55 }
  0x54   :  { %503 = vmatprep.subr.bf16.mxu0 %v646_v0 }
  0x56   :  { %488 = vmatpush3.bf16.msra.mxu1 %v532_v12 }
  0x57   :  { %504 = vmatpush3.bf16.msra.mxu0 %v538_v56 }
  0x58   :  { %505 = vmatprep.subr.bf16.mxu0 %v646_v0 }
  0x5b   :  { %506 = vmatpush3.bf16.msra.mxu0 %v539_v57 }
  0x5c   :  { %507 = vmatprep.subr.bf16.mxu0 %v646_v0 }
  0x5f   :  { %508 = vmatpush3.bf16.msra.mxu0 %v540_v58 }
 0x114   :  { %v114_v13 = vpop.f32.mrb[0].mxu0 }
 0x115   :  { %v120_v14 = vrot.slane %v114_v13, 4  ;;  %v127_v15 = vmul.f32 %v114_v13, %v114_v13  ;;  %v471_v16 = vpop.f32.mrb[1].mxu0 }
 0x116   :  { %v117_v17 = vpop.f32.mrb[2].mxu0 }
 0x117   :  { %v121_v18 = vadd.f32 %v120_v14, %v114_v13  ;;  %v128_v19 = vrot.slane %v127_v15, 4  ;;  %v472_v20 = vpop.f32.mrb[3].mxu0 }
 0x119   :  { %v122_v21 = vrot.slane %v121_v18, 2  ;;  %v129_v22 = vadd.f32 %v128_v19, %v127_v15 }
 0x11b   :  { %v123_v23 = vadd.f32 %v122_v21, %v121_v18  ;;  %v130_v24 = vrot.slane %v129_v22, 2  ;;  %v279_v18 = vld [vmem:[%s767_s3 + $0x2] sm:$0x1]  ;;  %v283_v21 = vld [vmem:[%s767_s3 + $0x3] sm:$0x1] }
 0x11d   :  { %v124_v25 = vrot.slane %v123_v23, 1  ;;  %v131_v26 = vadd.f32 %v130_v24, %v129_v22 }
 0x11f   :  { %v125_v27 = vadd.f32 %v124_v25, %v123_v23  ;;  %v132_v28 = vrot.slane %v131_v26, 1 }
 0x121   :  { %v126_v29 = vmul.f32 0.125, %v125_v27  ;;  %v133_v30 = vadd.f32 %v132_v28, %v131_v26 }
 0x123   :  { %v134_v31 = vmul.f32 0.125, %v133_v30  ;;  %v135_v32 = vmul.f32 %v126_v29, %v126_v29  ;;  %v435_v30 = vld [vmem:[%s767_s3 + $0x4] ss:$0 sm:$0xff] }
 0x125   :  { %v136_v33 = vsub.f32 %v134_v31, %v135_v32 }
 0x127   :  { %v137_v34 = vmax.f32 %v136_v33, 0.0 }
 0x129   :  { %v139_v35 = vadd.f32 1e-05, %v137_v34 }
 0x12b   :  { %541 = vrsqrt.f32 %v139_v35 }
 0x135   :  { %v542_v40 = vpop.eup %541 }
 0x136   :  { %v141_v41 = vmul.f32 %v542_v40, %v138_v38 }
 0x138   :  { %v148_v43 = vrot.slane %v141_v41, %v727_v39  ;;  %v143_v44 = vmul.f32 %v141_v41, %v126_v29 }
 0x13a   :  { %v144_v45 = vsub.f32 %v142_v42, %v143_v44  ;;  %v149_v46 = vmul.f32 %v148_v43, %v114_v13 }
 0x13c   :  { %v153_v47 = vrot.slane %v144_v45, %v727_v39 }
 0x13e   :  { %v154_v48 = vadd.f32 %v153_v47, %v149_v46 }
 0x140   :  { %v155_v49 = vmax.f32 %v154_v48, 0.0 }
 0x142   :  { %v156_v50 = vpack.c.bf16 %v155_v49, %v155_v49 }
 0x144   :  { %490 = vmatmul.mubr.bf16.vlgmr.msra.gmra.mrb[0].mxu1 %v156_v50 }
 0x217   :  { %v255_v59 = vpop.f32.mrb[0].mxu1 }
 0x218   :  { %v261_v60 = vrot.slane %v255_v59, 4  ;;  %v268_v61 = vmul.f32 %v255_v59, %v255_v59  ;;  %v491_v62 = vpop.f32.mrb[1].mxu1 }
 0x219   :  { %v258_v63 = vpop.f32.mrb[2].mxu1 }
 0x21a   :  { %v262_v1 = vadd.f32 %v261_v60, %v255_v59  ;;  %v269_v2 = vrot.slane %v268_v61, 4  ;;  %v492_v3 = vpop.f32.mrb[3].mxu1 }
 0x21c   :  { %v263_v4 = vrot.slane %v262_v1, 2  ;;  %v270_v5 = vadd.f32 %v269_v2, %v268_v61 }
 0x21e   :  { %v264_v6 = vadd.f32 %v263_v4, %v262_v1  ;;  %v271_v7 = vrot.slane %v270_v5, 2 }
 0x220   :  { %v265_v8 = vrot.slane %v264_v6, 1  ;;  %v272_v9 = vadd.f32 %v271_v7, %v270_v5 }
 0x222   :  { %v266_v10 = vadd.f32 %v265_v8, %v264_v6  ;;  %v273_v11 = vrot.slane %v272_v9, 1 }
 0x224   :  { %v267_v12 = vmul.f32 0.125, %v266_v10  ;;  %v274_v0 = vadd.f32 %v273_v11, %v272_v9 }
 0x226   :  { %v275_v13 = vmul.f32 0.125, %v274_v0  ;;  %v276_v14 = vmul.f32 %v267_v12, %v267_v12 }
 0x228   :  { %v277_v15 = vsub.f32 %v275_v13, %v276_v14 }
 0x22a   :  { %v278_v16 = vmax.f32 %v277_v15, 0.0 }
 0x22c   :  { %v280_v17 = vadd.f32 1e-05, %v278_v16 }
 0x22e   :  { %543 = vrsqrt.f32 %v280_v17 }
 0x238   :  { %v544_v19 = vpop.eup %543 }
 0x239   :  { %v282_v20 = vmul.f32 %v544_v19, %v279_v18 }
 0x23b   :  { %v284_v22 = vmul.f32 %v282_v20, %v267_v12  ;;  %v289_v23 = vrot.slane %v282_v20, %v727_v39 }
 0x23d   :  { %v285_v24 = vsub.f32 %v283_v21, %v284_v22  ;;  %v290_v25 = vmul.f32 %v289_v23, %v255_v59 }
 0x23f   :  { %v294_v26 = vrot.slane %v285_v24, %v727_v39 }
 0x241   :  { %v295_v27 = vadd.f32 %v294_v26, %v290_v25 }
 0x243   :  { %v296_v28 = vmax.f32 %v295_v27, 0.0 }
 0x245   :  { %v297_v29 = vpack.c.bf16 %v296_v28, %v296_v28 }
 0x247   :  { %510 = vmatmul.mubr.bf16.vlgmr.msra.gmra.mrb[4].mxu0 %v297_v29 }
 0x31a   :  { %v401_v31 = vpop.f32.mrb[4].mxu0 }
 0x31b   :  { %v402_v32 = vadd.f32 %v435_v30, %v401_v31  ;;  %v511_v33 = vpop.f32.mrb[5].mxu0 }
 0x31c   :  { %v404_v34 = vpop.f32.mrb[6].mxu0 }
 0x31d   :  { %407 = vst [vmem:[#allocation8] sm:$0xff] %v402_v32  ;;  %v512_v35 = vpop.f32.mrb[7].mxu0 }
 0x31e   :  { %622 = shalt.err (!%p619_p0)
}
 0x31f   :  { %s623_s3 = scalar_lea.hbm %s768_s4, 128 }
 0x320   :  { %p624_p1 = scmp.ne.s32.totalorder %s768_s4, %s623_s3  ;;  %p627_p2 = scmp.lt.u32.totalorder %s623_s3, %s768_s4 }
 0x322   :  { %p629_p3 = pnand %p627_p2, %p624_p1 }
 0x324   :  { %632 = shalt.err (!%p629_p3)
}
 0x325   :  { %417 = dma.vmem_to_hbm [thread:$0]  %s415_s11, 128, %s768_s4, [#allocation4]  }
 0x326   :  { %637 = dma.done.wait [#allocation4], 128  }
 0x327   :  { %638 = vsyncadd [#allocation4], 4294967168 }
 0x328   :  { %421 = vsyncpa [#allocation3], 1 }
 0x329   :  { %422 = vsyncpa [#allocation6], 1 }
 0x32a   :  { %423 = vsyncpa [#allocation4], 1 }

</bundles_post_ra>
